<compile_context>
chip_gen: v7x
topology: tpu7x:2x2x1
jax: 0.10.0
libtpu: 0.0.40
codegen_flags: <defaults>
</compile_context>

<pallas_src>
import functools
import math

import jax
import jax.numpy as jnp
from jax import lax
from jax.experimental import pallas as pl
from jax.experimental.pallas import tpu as pltpu


def _round_up(n, m):
    return (n + m - 1) // m * m


def _pad_axis(a, axis, new_size):
    pad = new_size - a.shape[axis]
    if pad == 0:
        return a
    widths = [(0, 0)] * a.ndim
    widths[axis] = (0, pad)
    return jnp.pad(a, widths)


def fsmn_block_kernel(*refs, memory_size, state_rows, o_real, has_skip):
    """One (batch, time-tile) block per grid step.

    Refs (has_skip=True):
      x_ref    : (1, tT, Ip)
      skip_ref : (1, tT, Pp)
      w1_ref   : (Ip, Pp)
      b1_ref   : (1, Pp)
      w2_ref   : (Pp, Op)
      b2_ref   : (1, Op)
      mem_ref  : (M, Pp)      memory_weights[P,1,M] transposed+padded -> (M, Pp)
      gamma_ref: (1, Op)
      beta_ref : (1, Op)
      out_ref  : (1, tT, Op)  LayerNorm(h)
      phat_ref : (1, tT, Pp)  memory output (+ skip)
      state_ref: (SB, Pp)     carried tail of p from the previous time tile
    """
    if has_skip:
        (x_ref, skip_ref, w1_ref, b1_ref, w2_ref, b2_ref, mem_ref,
         gamma_ref, beta_ref, out_ref, phat_ref, state_ref) = refs
    else:
        (x_ref, w1_ref, b1_ref, w2_ref, b2_ref, mem_ref,
         gamma_ref, beta_ref, out_ref, phat_ref, state_ref) = refs
        skip_ref = None

    M = memory_size
    SB = state_rows
    t_idx = pl.program_id(1)

    # Fresh sequence -> the causal left padding is all zeros.
    @pl.when(t_idx == 0)
    def _():
        state_ref[...] = jnp.zeros_like(state_ref)

    # Hoisted loads: nothing is re-loaded / re-broadcast inside the tap loop.
    x = x_ref[0]                                   # (tT, Ip)
    tT = x.shape[0]
    w1 = w1_ref[...]
    b1 = b1_ref[...]
    w2 = w2_ref[...]
    b2 = b2_ref[...]
    mem = mem_ref[...]                             # (M, Pp)
    gamma = gamma_ref[...]
    beta = beta_ref[...]

    # p = x @ W1 + b1   (kept in f32; lane-aligned K/N for the MXU)
    p = jnp.dot(x, w1, preferred_element_type=jnp.float32) + b1   # (tT, Pp)

    # Causal depthwise conv along time (F.conv1d, groups=P, left pad M-1):
    #   h_hat[t, c] = sum_{d=0..M-1} mem[M-1-d, c] * p_global[t-d, c]
    # p_ext = [carried tail of previous tile ; p] is sublane aligned; each tap
    # is one XLU roll of p_ext followed by an aligned row slice.
    h_hat = p * mem[M - 1:M, :]                    # d = 0 tap
    if M > 1:
        p_ext = jnp.concatenate([state_ref[...], p], axis=0)      # (SB+tT, Pp)
        for d in range(1, M):
            shifted = pltpu.roll(p_ext, shift=d, axis=0)[SB:, :]  # p_global[t-d]
            h_hat = h_hat + shifted * mem[M - 1 - d:M - d, :]

    # Carry the last SB rows of p for the next time tile of this sequence.
    state_ref[...] = p[tT - SB:, :]

    p_hat = h_hat + skip_ref[0] if has_skip else h_hat
    phat_ref[0] = p_hat.astype(phat_ref.dtype)

    # h = p @ W2 + b2, then LayerNorm over the *real* O features.
    h = jnp.dot(p, w2, preferred_element_type=jnp.float32) + b2   # (tT, Op)
    o_pad = h.shape[-1]
    if o_real == o_pad:
        mean = jnp.mean(h, axis=-1, keepdims=True)
        diff = h - mean
        var = jnp.mean(diff * diff, axis=-1, keepdims=True)
    else:
        # Padded feature columns of h are exactly zero (weights/biases padded
        # with zeros), so the lane sum equals the sum over real features.
        inv_o = jnp.float32(1.0 / o_real)
        lane = lax.broadcasted_iota(jnp.int32, (1, o_pad), 1)
        o_mask = (lane < o_real).astype(jnp.float32)
        mean = jnp.sum(h, axis=-1, keepdims=True) * inv_o
        diff = (h - mean) * o_mask
        var = jnp.sum(diff * diff, axis=-1, keepdims=True) * inv_o
    normed = diff * lax.rsqrt(var + 1e-5)          # eps = PyTorch LayerNorm default
    out_ref[0] = (normed * gamma + beta).astype(out_ref.dtype)


def fsmn_block(x, skip_conn, params, *, memory_size, time_tile=256):
    """x: (B, T, input_size); skip_conn: (B, T, projection_size) or None."""
    B, T, I = x.shape
    W1, b1, W2, b2, mem_w, gamma, beta = (
        params["W1"], params["b1"], params["W2"], params["b2"],
        params["mem_w"], params["gamma"], params["beta"])
    P = W1.shape[1]
    O = W2.shape[1]
    M = memory_size
    has_skip = skip_conn is not None

    # ---- static tiling / padding decisions --------------------------------
    Ip, Pp, Op = _round_up(I, 128), _round_up(P, 128), _round_up(O, 128)
    SB = _round_up(max(M - 1, 1), 8)                       # carried conv rows
    tT = max(SB, min(_round_up(time_tile, 8), _round_up(T, 8)))
    Tp = _round_up(T, tT)
    nT = Tp // tT

    # ---- zero-pad parameters / activations to lane-dense shapes ----------
    dtype = x.dtype
    W1p = _pad_axis(_pad_axis(W1, 0, Ip), 1, Pp)
    W2p = _pad_axis(_pad_axis(W2, 0, Pp), 1, Op)
    b1p = _pad_axis(b1.reshape(1, P), 1, Pp)
    b2p = _pad_axis(b2.reshape(1, O), 1, Op)
    memp = _pad_axis(jnp.transpose(mem_w.reshape(P, M)), 1, Pp)      # (M, Pp)
    gammap = _pad_axis(gamma.reshape(1, O), 1, Op)
    betap = _pad_axis(beta.reshape(1, O), 1, Op)

    xp = _pad_axis(_pad_axis(x, 1, Tp), 2, Ip)
    inputs = [xp]
    in_specs = [pl.BlockSpec((1, tT, Ip), lambda b, t: (b, t, 0))]
    if has_skip:
        skipp = _pad_axis(_pad_axis(skip_conn, 1, Tp), 2, Pp)
        inputs.append(skipp)
        in_specs.append(pl.BlockSpec((1, tT, Pp), lambda b, t: (b, t, 0)))
    inputs += [W1p, b1p, W2p, b2p, memp, gammap, betap]

    full = lambda b, t: (0, 0)
    # Weights use a constant index_map so they are fetched once and never
    # re-DMA'd across grid steps.
    in_specs += [
        pl.BlockSpec((Ip, Pp), full),
        pl.BlockSpec((1, Pp), full),
        pl.BlockSpec((Pp, Op), full),
        pl.BlockSpec((1, Op), full),
        pl.BlockSpec((M, Pp), full),
        pl.BlockSpec((1, Op), full),
        pl.BlockSpec((1, Op), full),
    ]

    kernel = functools.partial(
        fsmn_block_kernel, memory_size=M, state_rows=SB,
        o_real=O, has_skip=has_skip)

    # ---- cost / VMEM hints -------------------------------------------------
    itemsize = 4
    act_bytes = B * Tp * (Ip + Op + Pp + (Pp if has_skip else 0)) * itemsize
    w_bytes = (Ip * Pp + Pp * Op + M * Pp + Pp + 3 * Op) * itemsize
    cost = pl.CostEstimate(
        flops=int(2 * B * Tp * (Ip * Pp + Pp * Op)
                  + 2 * B * Tp * Pp * M + 8 * B * Tp * Op),
        transcendentals=int(B * Tp),
        bytes_accessed=int(act_bytes + w_bytes))
    tile_bytes = (2 * tT * (Ip + Op + 2 * Pp) * itemsize   # double-buffered act tiles
                  + 2 * w_bytes                            # double-buffered weights
                  + SB * Pp * itemsize                     # carried conv state
                  + 6 * (SB + tT) * Pp * itemsize)         # in-kernel temporaries
    # Cap below v7x physical VMEM (64 MiB/TC) to leave compiler headroom.
    vmem_limit = int(min(max(2 * tile_bytes, 32 * 1024 * 1024), 48 * 1024 * 1024))

    out_pad, phat_pad = pl.pallas_call(
        kernel,
        out_shape=(
            jax.ShapeDtypeStruct((B, Tp, Op), dtype),
            jax.ShapeDtypeStruct((B, Tp, Pp), dtype),
        ),
        grid_spec=pltpu.PrefetchScalarGridSpec(
            num_scalar_prefetch=0,
            grid=(B, nT),
            in_specs=in_specs,
            out_specs=[
                pl.BlockSpec((1, tT, Op), lambda b, t: (b, t, 0)),
                pl.BlockSpec((1, tT, Pp), lambda b, t: (b, t, 0)),
            ],
            scratch_shapes=[pltpu.VMEM((SB, Pp), jnp.float32)],
        ),
        compiler_params=pltpu.CompilerParams(
            dimension_semantics=("parallel", "arbitrary"),
            vmem_limit_bytes=vmem_limit),
        cost_estimate=cost,
    )(*inputs)

    out = out_pad[:, :T, :O]
    p_hat = phat_pad[:, :T, :P]
    return out, p_hat


def xavier_uniform(key, shape, fan_in, fan_out, dtype=jnp.float32):
    bound = math.sqrt(6.0 / (fan_in + fan_out))
    return jax.random.uniform(key, shape, dtype, minval=-bound, maxval=bound)


def init_params(key, memory_size, input_size, output_size, projection_size):
    k1, k2, k3 = jax.random.split(key, 3)
    W1 = xavier_uniform(k1, (input_size, projection_size),
                        input_size, projection_size)
    W2 = xavier_uniform(k2, (projection_size, output_size),
                        projection_size, output_size)
    # memory_weights shape (P, 1, M): PyTorch xavier fans = (1*M, P*M)
    mem_w = xavier_uniform(k3, (projection_size, 1, memory_size),
                           1 * memory_size, projection_size * memory_size)
    return {
        "W1": W1,
        "W2": W2,
        "b1": jnp.ones((projection_size,), jnp.float32),
        "b2": jnp.ones((output_size,), jnp.float32),
        "mem_w": mem_w,
        "gamma": jnp.ones((output_size,), jnp.float32),   # LayerNorm weight
        "beta": jnp.zeros((output_size,), jnp.float32),   # LayerNorm bias
    }


def fsmn_block_ref(x, skip_conn, params, *, memory_size):
    """Pure-JAX reference mirroring the PyTorch forward."""
    W1, b1, W2, b2 = params["W1"], params["b1"], params["W2"], params["b2"]
    mem_w = params["mem_w"][:, 0, :]                       # (P, M)
    M = memory_size
    p = x @ W1 + b1                                        # (B, T, P)
    p_pad = jnp.pad(p, ((0, 0), (M - 1, 0), (0, 0)))
    h_hat = jnp.zeros_like(p)
    for k in range(M):
        h_hat = h_hat + p_pad[:, k:k + p.shape[1], :] * mem_w[:, k][None, None, :]
    p_hat = h_hat if skip_conn is None else h_hat + skip_conn
    h = p @ W2 + b2
    mean = jnp.mean(h, axis=-1, keepdims=True)
    var = jnp.mean((h - mean) ** 2, axis=-1, keepdims=True)
    out = (h - mean) / jnp.sqrt(var + 1e-5) * params["gamma"] + params["beta"]
    return out, p_hat


if __name__ == "__main__":
    memory_size, input_size, output_size, projection_size = 4, 32, 32, 32
    B, T = 2, 48

    key = jax.random.PRNGKey(0)
    kp, kx, ks = jax.random.split(key, 3)
    params = init_params(kp, memory_size, input_size, output_size, projection_size)
    x = jax.random.normal(kx, (B, T, input_size), jnp.float32)
    skip = jax.random.normal(ks, (B, T, projection_size), jnp.float32)

    # Small time_tile so the test exercises multiple T tiles + carried conv state.
    out, p_hat = fsmn_block(x, skip, params, memory_size=memory_size, time_tile=16)
    jax.block_until_ready((out, p_hat))
    out_ref, p_hat_ref = fsmn_block_ref(x, skip, params, memory_size=memory_size)
    assert jnp.allclose(out, out_ref, atol=1e-4, rtol=1e-4), "out mismatch"
    assert jnp.allclose(p_hat, p_hat_ref, atol=1e-4, rtol=1e-4), "p_hat mismatch"

    # skip_conn=None path compiles a variant without the skip input (no zero DMA).
    out2, p_hat2 = fsmn_block(x, None, params, memory_size=memory_size, time_tile=16)
    jax.block_until_ready((out2, p_hat2))
    out2_ref, p_hat2_ref = fsmn_block_ref(x, None, params, memory_size=memory_size)
    assert jnp.allclose(out2, out2_ref, atol=1e-4, rtol=1e-4), "out mismatch (no skip)"
    assert jnp.allclose(p_hat2, p_hat2_ref, atol=1e-4, rtol=1e-4), "p_hat mismatch (no skip)"

    print("KERNEL_OK")
</pallas_src>

<mosaic_0001>
module attributes {stable_mosaic.version = 11 : i64} {
  func.func @fsmn_block_kernel(%arg0: i32, %arg1: i32, %arg2: memref<1x16x128xf32, #tpu.memory_space<vmem>>, %arg3: memref<1x16x128xf32, #tpu.memory_space<vmem>>, %arg4: memref<128x128xf32, #tpu.memory_space<vmem>>, %arg5: memref<1x128xf32, #tpu.memory_space<vmem>>, %arg6: memref<128x128xf32, #tpu.memory_space<vmem>>, %arg7: memref<1x128xf32, #tpu.memory_space<vmem>>, %arg8: memref<4x128xf32, #tpu.memory_space<vmem>>, %arg9: memref<1x128xf32, #tpu.memory_space<vmem>>, %arg10: memref<1x128xf32, #tpu.memory_space<vmem>>, %arg11: memref<1x16x128xf32, #tpu.memory_space<vmem>>, %arg12: memref<1x16x128xf32, #tpu.memory_space<vmem>>, %arg13: memref<8x128xf32, #tpu.memory_space<vmem>>) attributes {dimension_semantics = [#tpu.dimension_semantics<parallel>, #tpu.dimension_semantics<arbitrary>], iteration_bounds = array<i64: 2, 3>, scalar_prefetch = 0 : i64, scratch_operands = 1 : i64, tpu.core_type = #tpu.core_type<tc>, window_params = [{transform_indices = @transform_0, window_bounds = array<i64: 1, 16, 128>}, {transform_indices = @transform_1, window_bounds = array<i64: 1, 16, 128>}, {pipeline_mode = #tpu.pipeline_mode<synchronous>, transform_indices = @transform_2, window_bounds = array<i64: 128, 128>}, {pipeline_mode = #tpu.pipeline_mode<synchronous>, transform_indices = @transform_3, window_bounds = array<i64: 1, 128>}, {pipeline_mode = #tpu.pipeline_mode<synchronous>, transform_indices = @transform_4, window_bounds = array<i64: 128, 128>}, {pipeline_mode = #tpu.pipeline_mode<synchronous>, transform_indices = @transform_5, window_bounds = array<i64: 1, 128>}, {pipeline_mode = #tpu.pipeline_mode<synchronous>, transform_indices = @transform_6, window_bounds = array<i64: 4, 128>}, {pipeline_mode = #tpu.pipeline_mode<synchronous>, transform_indices = @transform_7, window_bounds = array<i64: 1, 128>}, {pipeline_mode = #tpu.pipeline_mode<synchronous>, transform_indices = @transform_8, window_bounds = array<i64: 1, 128>}, {transform_indices = @transform_9, window_bounds = array<i64: 1, 16, 128>}, {transform_indices = @transform_10, window_bounds = array<i64: 1, 16, 128>}]} {
    %c0_i32 = arith.constant 0 : i32
    %0 = arith.cmpi eq, %arg1, %c0_i32 : i32
    %1 = arith.extui %0 : i1 to i32
    %c0_i32_0 = arith.constant 0 : i32
    %2 = arith.cmpi ne, %1, %c0_i32_0 : i32
    scf.if %2 {
      %cst_36 = arith.constant 0.000000e+00 : f32
      %79 = vector.broadcast %cst_36 : f32 to vector<8x128xf32>
      %c0_37 = arith.constant 0 : index
      %c0_38 = arith.constant 0 : index
      %80 = vector.load %arg13[%c0_37, %c0_38] : memref<8x128xf32, #tpu.memory_space<vmem>>, vector<8x128xf32>
      tpu.vector_store %arg13[%c0_37, %c0_38], %79 {strides = array<i32>} : memref<8x128xf32, #tpu.memory_space<vmem>>, vector<8x128xf32>,
    } else {
    }
    %c0 = arith.constant 0 : index
    %c0_1 = arith.constant 0 : index
    %c0_2 = arith.constant 0 : index
    %3 = vector.load %arg2[%c0, %c0_1, %c0_2] : memref<1x16x128xf32, #tpu.memory_space<vmem>>, vector<1x16x128xf32>
    %4 = vector.shape_cast %3 : vector<1x16x128xf32> to vector<16x128xf32>
    %c0_3 = arith.constant 0 : index
    %c0_4 = arith.constant 0 : index
    %5 = vector.load %arg4[%c0_3, %c0_4] : memref<128x128xf32, #tpu.memory_space<vmem>>, vector<128x128xf32>
    %c0_5 = arith.constant 0 : index
    %c0_6 = arith.constant 0 : index
    %6 = vector.load %arg5[%c0_5, %c0_6] : memref<1x128xf32, #tpu.memory_space<vmem>>, vector<1x128xf32>
    %c0_7 = arith.constant 0 : index
    %c0_8 = arith.constant 0 : index
    %7 = vector.load %arg6[%c0_7, %c0_8] : memref<128x128xf32, #tpu.memory_space<vmem>>, vector<128x128xf32>
    %c0_9 = arith.constant 0 : index
    %c0_10 = arith.constant 0 : index
    %8 = vector.load %arg7[%c0_9, %c0_10] : memref<1x128xf32, #tpu.memory_space<vmem>>, vector<1x128xf32>
    %c0_11 = arith.constant 0 : index
    %c0_12 = arith.constant 0 : index
    %9 = vector.load %arg8[%c0_11, %c0_12] : memref<4x128xf32, #tpu.memory_space<vmem>>, vector<4x128xf32>
    %c0_13 = arith.constant 0 : index
    %c0_14 = arith.constant 0 : index
    %10 = vector.load %arg9[%c0_13, %c0_14] : memref<1x128xf32, #tpu.memory_space<vmem>>, vector<1x128xf32>
    %c0_15 = arith.constant 0 : index
    %c0_16 = arith.constant 0 : index
    %11 = vector.load %arg10[%c0_15, %c0_16] : memref<1x128xf32, #tpu.memory_space<vmem>>, vector<1x128xf32>
    %cst = arith.constant dense<0.000000e+00> : vector<16x128xf32>
    %12 = tpu.matmul %4, %5, %cst {dimension_numbers = #tpu.dot_dimension_numbers<[1], [0], [0], [1], [0, 0, 1, 1], [], []>} : vector<16x128xf32>, vector<128x128xf32>, vector<16x128xf32> -> vector<16x128xf32>
    %13 = vector.broadcast %6 : vector<1x128xf32> to vector<16x128xf32>
    %14 = arith.addf %12, %13 : vector<16x128xf32>
    %15 = vector.extract_strided_slice %9 {offsets = [3, 0], sizes = [1, 128], strides = [1, 1]} : vector<4x128xf32> to vector<1x128xf32>
    %16 = vector.broadcast %15 : vector<1x128xf32> to vector<16x128xf32>
    %17 = arith.mulf %14, %16 : vector<16x128xf32>
    %c0_17 = arith.constant 0 : index
    %c0_18 = arith.constant 0 : index
    %18 = vector.load %arg13[%c0_17, %c0_18] : memref<8x128xf32, #tpu.memory_space<vmem>>, vector<8x128xf32>
    %19 = tpu.concatenate %18, %14 in 0 : vector<8x128xf32>, vector<16x128xf32> -> vector<24x128xf32>
    %c1_i32 = arith.constant 1 : i32
    %20 = tpu.dynamic_rotate %19 by %c1_i32 dim 0 : vector<24x128xf32>, i32 -> vector<24x128xf32>
    %21 = vector.extract_strided_slice %20 {offsets = [8, 0], sizes = [16, 128], strides = [1, 1]} : vector<24x128xf32> to vector<16x128xf32>
    %22 = vector.extract_strided_slice %9 {offsets = [2, 0], sizes = [1, 128], strides = [1, 1]} : vector<4x128xf32> to vector<1x128xf32>
    %23 = vector.broadcast %22 : vector<1x128xf32> to vector<16x128xf32>
    %24 = arith.mulf %21, %23 : vector<16x128xf32>
    %25 = arith.addf %17, %24 : vector<16x128xf32>
    %c2_i32 = arith.constant 2 : i32
    %26 = tpu.dynamic_rotate %19 by %c2_i32 dim 0 : vector<24x128xf32>, i32 -> vector<24x128xf32>
    %27 = vector.extract_strided_slice %26 {offsets = [8, 0], sizes = [16, 128], strides = [1, 1]} : vector<24x128xf32> to vector<16x128xf32>
    %28 = vector.extract_strided_slice %9 {offsets = [1, 0], sizes = [1, 128], strides = [1, 1]} : vector<4x128xf32> to vector<1x128xf32>
    %29 = vector.broadcast %28 : vector<1x128xf32> to vector<16x128xf32>
    %30 = arith.mulf %27, %29 : vector<16x128xf32>
    %31 = arith.addf %25, %30 : vector<16x128xf32>
    %c3_i32 = arith.constant 3 : i32
    %32 = tpu.dynamic_rotate %19 by %c3_i32 dim 0 : vector<24x128xf32>, i32 -> vector<24x128xf32>
    %33 = vector.extract_strided_slice %32 {offsets = [8, 0], sizes = [16, 128], strides = [1, 1]} : vector<24x128xf32> to vector<16x128xf32>
    %34 = vector.extract_strided_slice %9 {offsets = [0, 0], sizes = [1, 128], strides = [1, 1]} : vector<4x128xf32> to vector<1x128xf32>
    %35 = vector.broadcast %34 : vector<1x128xf32> to vector<16x128xf32>
    %36 = arith.mulf %33, %35 : vector<16x128xf32>
    %37 = arith.addf %31, %36 : vector<16x128xf32>
    %38 = vector.extract_strided_slice %14 {offsets = [8, 0], sizes = [8, 128], strides = [1, 1]} : vector<16x128xf32> to vector<8x128xf32>
    %c0_19 = arith.constant 0 : index
    %c0_20 = arith.constant 0 : index
    %39 = vector.load %arg13[%c0_19, %c0_20] : memref<8x128xf32, #tpu.memory_space<vmem>>, vector<8x128xf32>
    tpu.vector_store %arg13[%c0_19, %c0_20], %38 {strides = array<i32>} : memref<8x128xf32, #tpu.memory_space<vmem>>, vector<8x128xf32>,
    %c0_21 = arith.constant 0 : index
    %c0_22 = arith.constant 0 : index
    %c0_23 = arith.constant 0 : index
    %40 = vector.load %arg3[%c0_21, %c0_22, %c0_23] : memref<1x16x128xf32, #tpu.memory_space<vmem>>, vector<1x16x128xf32>
    %41 = vector.shape_cast %40 : vector<1x16x128xf32> to vector<16x128xf32>
    %42 = arith.addf %37, %41 : vector<16x128xf32>
    %c0_24 = arith.constant 0 : index
    %c0_25 = arith.constant 0 : index
    %c0_26 = arith.constant 0 : index
    %43 = vector.load %arg12[%c0_24, %c0_25, %c0_26] : memref<1x16x128xf32, #tpu.memory_space<vmem>>, vector<1x16x128xf32>
    %44 = vector.shape_cast %43 : vector<1x16x128xf32> to vector<16x128xf32>
    %45 = vector.shape_cast %42 : vector<16x128xf32> to vector<1x16x128xf32>
    tpu.vector_store %arg12[%c0_24, %c0_25, %c0_26], %45 {strides = array<i32>} : memref<1x16x128xf32, #tpu.memory_space<vmem>>, vector<1x16x128xf32>,
    %cst_27 = arith.constant dense<0.000000e+00> : vector<16x128xf32>
    %46 = tpu.matmul %14, %7, %cst_27 {dimension_numbers = #tpu.dot_dimension_numbers<[1], [0], [0], [1], [0, 0, 1, 1], [], []>} : vector<16x128xf32>, vector<128x128xf32>, vector<16x128xf32> -> vector<16x128xf32>
    %47 = vector.broadcast %8 : vector<1x128xf32> to vector<16x128xf32>
    %48 = arith.addf %46, %47 : vector<16x128xf32>
    %49 = tpu.iota {dimensions = array<i32: 1>} : vector<1x128xi32>
    %c32_i32 = arith.constant 32 : i32
    %50 = vector.broadcast %c32_i32 : i32 to vector<1x128xi32>
    %51 = arith.cmpi slt, %49, %50 : vector<1x128xi32>
    %52 = arith.extui %51 : vector<1x128xi1> to vector<1x128xi32>
    %53 = arith.sitofp %52 : vector<1x128xi32> to vector<1x128xf32>
    %cst_28 = arith.constant dense<0.000000e+00> : vector<16xf32>
    %54 = vector.multi_reduction <add>, %48, %cst_28 [1] : vector<16x128xf32> to vector<16xf32>
    %55 = vector.shape_cast %54 : vector<16xf32> to vector<16x1xf32>
    %cst_29 = arith.constant 3.125000e-02 : f32
    %56 = vector.broadcast %cst_29 : f32 to vector<16x1xf32>
    %57 = arith.mulf %55, %56 : vector<16x1xf32>
    %58 = vector.broadcast %57 : vector<16x1xf32> to vector<16x128xf32>
    %59 = arith.subf %48, %58 : vector<16x128xf32>
    %60 = vector.broadcast %53 : vector<1x128xf32> to vector<16x128xf32>
    %61 = arith.mulf %59, %60 : vector<16x128xf32>
    %62 = arith.mulf %61, %61 : vector<16x128xf32>
    %cst_30 = arith.constant dense<0.000000e+00> : vector<16xf32>
    %63 = vector.multi_reduction <add>, %62, %cst_30 [1] : vector<16x128xf32> to vector<16xf32>
    %64 = vector.shape_cast %63 : vector<16xf32> to vector<16x1xf32>
    %cst_31 = arith.constant 3.125000e-02 : f32
    %65 = vector.broadcast %cst_31 : f32 to vector<16x1xf32>
    %66 = arith.mulf %64, %65 : vector<16x1xf32>
    %cst_32 = arith.constant 9.99999974E-6 : f32
    %67 = vector.broadcast %cst_32 : f32 to vector<16x1xf32>
    %68 = arith.addf %66, %67 : vector<16x1xf32>
    %69 = math.rsqrt %68 : vector<16x1xf32>
    %70 = vector.broadcast %69 : vector<16x1xf32> to vector<16x128xf32>
    %71 = arith.mulf %61, %70 : vector<16x128xf32>
    %72 = vector.broadcast %10 : vector<1x128xf32> to vector<16x128xf32>
    %73 = arith.mulf %71, %72 : vector<16x128xf32>
    %74 = vector.broadcast %11 : vector<1x128xf32> to vector<16x128xf32>
    %75 = arith.addf %73, %74 : vector<16x128xf32>
    %c0_33 = arith.constant 0 : index
    %c0_34 = arith.constant 0 : index
    %c0_35 = arith.constant 0 : index
    %76 = vector.load %arg11[%c0_33, %c0_34, %c0_35] : memref<1x16x128xf32, #tpu.memory_space<vmem>>, vector<1x16x128xf32>
    %77 = vector.shape_cast %76 : vector<1x16x128xf32> to vector<16x128xf32>
    %78 = vector.shape_cast %75 : vector<16x128xf32> to vector<1x16x128xf32>
    tpu.vector_store %arg11[%c0_33, %c0_34, %c0_35], %78 {strides = array<i32>} : memref<1x16x128xf32, #tpu.memory_space<vmem>>, vector<1x16x128xf32>,
    return
  }
  func.func @transform_0(%arg0: i32, %arg1: i32) -> (i32, i32, i32) {
    %c0_i32 = arith.constant 0 : i32
    %c0_i32_0 = arith.constant 0 : i32
    return %arg0, %arg1, %c0_i32 : i32, i32, i32
  }
  func.func @transform_1(%arg0: i32, %arg1: i32) -> (i32, i32, i32) {
    %c0_i32 = arith.constant 0 : i32
    %c0_i32_0 = arith.constant 0 : i32
    return %arg0, %arg1, %c0_i32 : i32, i32, i32
  }
  func.func @transform_2(%arg0: i32, %arg1: i32) -> (i32, i32) {
    %c0_i32 = arith.constant 0 : i32
    %c0_i32_0 = arith.constant 0 : i32
    %c0_i32_1 = arith.constant 0 : i32
    return %c0_i32, %c0_i32_0 : i32, i32
  }
  func.func @transform_3(%arg0: i32, %arg1: i32) -> (i32, i32) {
    %c0_i32 = arith.constant 0 : i32
    %c0_i32_0 = arith.constant 0 : i32
    %c0_i32_1 = arith.constant 0 : i32
    return %c0_i32, %c0_i32_0 : i32, i32
  }
  func.func @transform_4(%arg0: i32, %arg1: i32) -> (i32, i32) {
    %c0_i32 = arith.constant 0 : i32
    %c0_i32_0 = arith.constant 0 : i32
    %c0_i32_1 = arith.constant 0 : i32
    return %c0_i32, %c0_i32_0 : i32, i32
  }
  func.func @transform_5(%arg0: i32, %arg1: i32) -> (i32, i32) {
    %c0_i32 = arith.constant 0 : i32
    %c0_i32_0 = arith.constant 0 : i32
    %c0_i32_1 = arith.constant 0 : i32
    return %c0_i32, %c0_i32_0 : i32, i32
  }
  func.func @transform_6(%arg0: i32, %arg1: i32) -> (i32, i32) {
    %c0_i32 = arith.constant 0 : i32
    %c0_i32_0 = arith.constant 0 : i32
    %c0_i32_1 = arith.constant 0 : i32
    return %c0_i32, %c0_i32_0 : i32, i32
  }
  func.func @transform_7(%arg0: i32, %arg1: i32) -> (i32, i32) {
    %c0_i32 = arith.constant 0 : i32
    %c0_i32_0 = arith.constant 0 : i32
    %c0_i32_1 = arith.constant 0 : i32
    return %c0_i32, %c0_i32_0 : i32, i32
  }
  func.func @transform_8(%arg0: i32, %arg1: i32) -> (i32, i32) {
    %c0_i32 = arith.constant 0 : i32
    %c0_i32_0 = arith.constant 0 : i32
    %c0_i32_1 = arith.constant 0 : i32
    return %c0_i32, %c0_i32_0 : i32, i32
  }
  func.func @transform_9(%arg0: i32, %arg1: i32) -> (i32, i32, i32) {
    %c0_i32 = arith.constant 0 : i32
    %c0_i32_0 = arith.constant 0 : i32
    return %arg0, %arg1, %c0_i32 : i32, i32, i32
  }
  func.func @transform_10(%arg0: i32, %arg1: i32) -> (i32, i32, i32) {
    %c0_i32 = arith.constant 0 : i32
    %c0_i32_0 = arith.constant 0 : i32
    return %arg0, %arg1, %c0_i32 : i32, i32, i32
  }
}

</mosaic_0001>

<bundles_post_ra>
// kernel: tpu_custom_call.1
= control target key start
LH: loop header
LB: loop body
LE: loop exit
PB: predicated region body
PF: predicated region fallthrough
CT: control target
= control target key end

     0   :  { %s2083_s0 = inlined_call_operand.hbm [shape: f32[2,48,128], index: 0, kind: input, shape index: {}]   ;;  %s2084_s1 = inlined_call_operand.hbm [shape: f32[2,48,128], index: 1, kind: input, shape index: {}]   ;;  %s2085_s2 = inlined_call_operand.hbm [shape: f32[128,128], index: 2, kind: input, shape index: {}]   ;;  %s2086_s3 = inlined_call_operand.vmem [shape: f32[1,128], index: 3, kind: input, shape index: {}]   ;;  %s2087_s4 = inlined_call_operand.hbm [shape: f32[128,128], index: 4, kind: input, shape index: {}]   ;;  %s2088_s5 = inlined_call_operand.vmem [shape: f32[1,128], index: 5, kind: input, shape index: {}]   ;;  %s2089_s6 = inlined_call_operand.vmem [shape: f32[4,128], index: 6, kind: input, shape index: {}]   ;;  %s2090_s7 = inlined_call_operand.vmem [shape: f32[1,128], index: 7, kind: input, shape index: {}]   ;;  %s2091_s8 = inlined_call_operand.vmem [shape: f32[1,128], index: 8, kind: input, shape index: {}]   ;;  %s2092_s9 = inlined_call_operand.hbm [shape: f32[2,48,128], index: 9, kind: output, shape index: {0}]   ;;  %s2093_s10 = inlined_call_operand.hbm [shape: f32[2,48,128], index: 10, kind: output, shape index: {1}]  }
   0x1   :  { %2110 = sst [smem:[#allocation26_spill]] %s2083_s0 }
   0x2   :  { %2111 = sst [smem:[#allocation27_spill]] %s2085_s2 }
   0x3   :  { %2112 = sst [smem:[#allocation28_spill]] %s2087_s4 }
   0x4   :  { %2113 = sst [smem:[#allocation29_spill]] %s2090_s7 }
   0x5   :  { %2114 = sst [smem:[#allocation30_spill]] %s2091_s8 }
   0x6   :  { %2115 = sst [smem:[#allocation31_spill]] %s2092_s9 }
   0x7   :  { %2116 = sst [smem:[#allocation32_spill]] %s2093_s10 }
   0x8   :  { %16 = vsyncpa [#allocation4], 0 }
   0x9   :  { %18 = vsyncpa [#allocation4 + $0x1], 0 }
   0xa   :  { %19 = vsyncpa [#allocation7], 0 }
   0xb   :  { %21 = vsyncpa [#allocation7 + $0x1], 0 }
   0xc   :  { %22 = vsyncpa [#allocation10], 0 }
   0xd   :  { %23 = vsyncpa [#allocation5], 0 }
   0xe   :  { %25 = vsyncpa [#allocation5 + $0x1], 0 }
   0xf   :  { %26 = vsyncpa [#allocation13], 0 }
  0x10   :  { %28 = vsyncpa [#allocation13 + $0x1], 0  ;;  %s1659_s13 = smov 0   ;;  %s1661_s14 = smov 0  }
  0x11   :  { %s1663_s15 = smov 0   ;;  %s1665_s16 = smov 0  }
  0x12   :  { %s1667_s17 = smov 0   ;;  %s1669_s18 = smov 0  }
  0x13   :  { %s1671_s19 = smov 0   ;;  %s1673_s20 = smov 0  }
  0x14 LB: > { %2117 = sst [smem:[#allocation20_spill]] %s1562_s13  ;;  %s1700_s21 = sadd.s32 4294967295, %s1590_s20   ;;  %s1590_s20 = sphi %s1673_s20, %s34_s20   ;;  %s1586_s19 = sphi %s1671_s19, %s2153_s19   ;;  %s1582_s18 = sphi %s1669_s18, %s2152_s18   ;;  %s1578_s17 = sphi %s1667_s17, %s2151_s17   ;;  %s1574_s16 = sphi %s1665_s16, %s2150_s16   ;;  %s1570_s15 = sphi %s1663_s15, %s2156_s15   ;;  %s1566_s14 = sphi %s1661_s14, %s2155_s14   ;;  %s1562_s13 = sphi %s1659_s13, %s2154_s13  }
  0x15   : > { %2118 = sst [smem:[#allocation21_spill]] %s1582_s18  ;;  %s1007_s22 = sadd.s32 4294967294, %s1590_s20  }
  0x16   : > { %2119 = sst [smem:[#allocation22_spill]] %s1586_s19  ;;  %p68_p0 = scmp.ne.s32.totalorder %s1566_s14, %s1562_s13 }
  0x17   : > { %p2097_p1 = scmp.eq.s32.totalorder %s1700_s21, 0  ;;  %p275_p3 = scmp.eq.s32.totalorder %s1007_s22, 5 }
  0x18   : > { %p1008_p5 = scmp.ge.s32.totalorder %s1590_s20, 1  ;;  %p310_p7 = scmp.lt.s32.totalorder %s1590_s20, 7 }
  0x19   : > { %p1709_p4 = por %p2097_p1, %p68_p0  ;;  %p1714_p6 = por %p275_p3, %p68_p0 }
  0x1a   : > { %p1719_p8 = pnand %p1008_p5, %p310_p7  ;;  %s1592_s26 = smov [#allocation8]  }
  0x1b   : > { %s2120_s23 = scalar_select %p1709_p4, 1, 0 }
  0x1c   : > { %s2121_s24 = scalar_select %p1714_p6, 1, 0 }
  0x1d   : > { %s2123_s25 = scalar_select %p1719_p8, 1, 0 }
  0x1e   : > { %2122 = sst [smem:[#allocation23_spill]] %s2121_s24  ;;  %s322_s27 = sshll.u32 %s1592_s26, 4  ;;  %s323_s27 = int_to_ptr.vmem [resolvable:$true] %s322_s27 }
  0x1f   : > { %p1229_p9 = pneg %p1719_p8  ;;  %s1593_s29 = smov [#allocation9]  }
  0x20   : > { %s338_s30 = sshll.u32 %s1593_s29, 4  ;;  %s2125_s2 = sld [smem:[#allocation27_spill]]  ;;  %s1731_s30 = int_to_ptr.vmem [resolvable:$true] %s338_s30 }
  0x21   : > { %p1727_p10 = pnand %p1229_p9, %p2097_p1 }
  0x23   : > { %p1334_p12 = pneg %p1727_p10 }
  0x26   : > { %s1332_s22 = scalar_lea.hbm %s2125_s2, 2048 }
  0x27   : > { %p1333_p11 = scmp.ne.s32.totalorder %s2125_s2, %s1332_s22  ;;  %p1339_p3 = scmp.lt.u32.totalorder %s1332_s22, %s2125_s2 }
  0x29   : > { %p1335_p13 = pnand %p1334_p12, %p1333_p11 }
  0x2b   : > { %p1336_p0 = pneg %p1335_p13 }
  0x2d   : > { %p1341_p5 = pnand %p1339_p3, %p1336_p0 }
  0x2f   : > { %1344 = shalt.err (!%p1341_p5)
}
  0x30   : > { %s1345_s29 = scalar_lea.vmem %s323_s27, 2048  ;;  %p1353_p2 = scmp.lt.s32.totalorder %s323_s27, %s323_s27 }
  0x31   : > { %p1346_p7 = scmp.ne.s32.totalorder %s323_s27, %s1345_s29  ;;  %p1354_p6 = scmp.lt.s32.totalorder %s1345_s29, %s1345_s29 }
  0x33   : > { %p1348_p9 = pnand %p1346_p7, %p1334_p12  ;;  %p1355_p4 = por %p1354_p6, %p1353_p2 }
  0x35   : > { %p1349_p1 = pneg %p1348_p9 }
  0x37   : > { %p1356_p8 = pnand %p1355_p4, %p1349_p1 }
  0x39   : > { %1359 = shalt.err (!%p1356_p8)
}
  0x3a   : > { %s2101_s24 = smov 128   ;;  %s2103_s11 = smov 8  }
  0x3b   : > { %1232 = dma.hbm_to_vmem [thread:$0]  (!%p1727_p10), %s2125_s2, 2048, %s323_s27, [#allocation7], %s2101_s24, %s2101_s24, %s2103_s11  }
  0x3c   : > { %s2126_s4 = sld [smem:[#allocation28_spill]] }
  0x42   : > { %s1360_s26 = scalar_lea.hbm %s2126_s4, 2048 }
  0x43   : > { %p1361_p1 = scmp.ne.s32.totalorder %s2126_s4, %s1360_s26  ;;  %p1367_p6 = scmp.lt.u32.totalorder %s1360_s26, %s2126_s4 }
  0x45   : > { %p1363_p2 = pnand %p1361_p1, %p1334_p12 }
  0x47   : > { %p1364_p4 = pneg %p1363_p2 }
  0x49   : > { %p1369_p8 = pnand %p1367_p6, %p1364_p4 }
  0x4b   : > { %1372 = shalt.err (!%p1369_p8)
}
  0x4c   : > { %s1373_s27 = scalar_lea.vmem %s1731_s30, 2048  ;;  %p1381_p3 = scmp.lt.s32.totalorder %s1731_s30, %s1731_s30 }
  0x4d   : > { %p1374_p11 = scmp.ne.s32.totalorder %s1731_s30, %s1373_s27  ;;  %p1382_p5 = scmp.lt.s32.totalorder %s1373_s27, %s1373_s27 }
  0x4f   : > { %p1376_p13 = pnand %p1374_p11, %p1334_p12  ;;  %p1383_p7 = por %p1382_p5, %p1381_p3 }
  0x51   : > { %p1377_p0 = pneg %p1376_p13 }
  0x53   : > { %p1384_p9 = pnand %p1383_p7, %p1377_p0 }
  0x55   : > { %1387 = shalt.err (!%p1384_p9)
}
  0x56   : > { %1235 = dma.hbm_to_vmem [thread:$0]  (!%p1727_p10), %s2126_s4, 2048, %s1731_s30, [#allocation10], %s2101_s24, %s2101_s24, %s2103_s11  }
  0x57   : > { %s43_s10 = sadd.s32 1, %s1582_s18  ;;  %s46_s28 = sadd.s32 1, %s1586_s19 }
  0x58   : > { %p44_p12 = scmp.ge.s32.totalorder %s43_s10, 3  ;;  %s55_s9 = sadd.s32 1, %s1570_s15 }
  0x59   : > { %p62_p1 = scmp.ne.s32.totalorder %s1570_s15, %s1566_s14  ;;  %p63_p2 = scmp.eq.s32.totalorder %s1590_s20, 0 }
  0x5a   : > { %s2158_s10 = smov (%p44_p12, %s43_s10), 0  ;;  %s2160_s28 = smov (!%p44_p12, %s46_s28), %s1586_s19 }
  0x5b   : > { %2127 = sst [smem:[#allocation24_spill]] %s2158_s10  ;;  %s51_s13 = ssub.s32 %s1582_s18, %s2158_s10 }
  0x5c   : > { %p1797_p4 = por %p63_p2, %p62_p1  ;;  %p48_p10 = scmp.ge.s32.totalorder %s2160_s28, 2 }
  0x5d   : > { %p2129_p6 = scmp.eq.s32.totalorder %s1700_s21, 5  ;;  %p1252_p11 = scmp.lt.s32.totalorder %s1590_s20, 6 }
  0x5e   : > { %s364_s22 = sand.u32 1, %s1570_s15   ;;  %s2162_s28 = smov (%p48_p10, %s2160_s28), 0 }
  0x5f   : > { %p1803_p8 = por %p2129_p6, %p62_p1  ;;  %2131 = sst [smem:[#allocation25_spill]] %s2162_s28 }
  0x60   : > { %s1811_s26 = sshll.u32 %s364_s22, 4  ;;  %s50_s29 = ssub.s32 %s1586_s19, %s2162_s28 }
  0x61   : > { %s52_s27 = sor.u32 %s51_s13, %s50_s29  ;;  %s1013_s7 = sshll.u32 %s1582_s18, 1 }
  0x62   : > { %p53_p13 = scmp.eq.s32.totalorder %s52_s27, 0  ;;  %s1209_s8 = smul.u32 6, %s1586_s19 }
  0x63   : > { %s368_s24 = scalar_lea.vmem [#allocation3], %s1811_s26  ;;  %p1820_p0 = pnand %p1252_p11, %p1797_p4 }
  0x64   : > { %s377_s11 = sshll.u32 %s368_s24, 4  ;;  %s1827_s10 = sadd.s32 %s1209_s8, %s1013_s7  ;;  %s1829_s11 = int_to_ptr.vmem [resolvable:$true] %s377_s11 }
  0x65   : > { %s1825_s4 = scalar_select %p53_p13, %s1570_s15, %s55_s9  }
  0x66   : > { %s2106_s13 = sshll.u32 %s1827_s10, 7  ;;  %s2133_s0 = sld [smem:[#allocation26_spill]] }
  0x67   : > { %s1839_s12 = scalar_lea.sflag [#allocation4], %s364_s22  ;;  %p1390_p5 = pneg %p1820_p0 }
  0x6c   : > { %s1837_s24 = scalar_lea.hbm %s2133_s0, %s2106_s13  ;;  %s1393_s29 = scalar_lea.hbm %s2133_s0, 1536 }
  0x6d   : > { %s1388_s9 = scalar_lea.hbm %s1837_s24, 256  ;;  %p1394_p12 = scmp.lt.u32.totalorder %s1837_s24, %s2133_s0 }
  0x6e   : > { %p1389_p3 = scmp.ne.s32.totalorder %s1837_s24, %s1388_s9  ;;  %p1395_p1 = scmp.lt.u32.totalorder %s1393_s29, %s1388_s9 }
  0x6f   : > { %p1397_p4 = scmp.lt.u32.totalorder %s1388_s9, %s1837_s24 }
  0x70   : > { %p1391_p7 = pnand %p1390_p5, %p1389_p3  ;;  %p1396_p2 = por %p1395_p1, %p1394_p12 }
  0x72   : > { %p1392_p9 = pneg %p1391_p7  ;;  %p1398_p10 = por %p1397_p4, %p1396_p2 }
  0x74   : > { %p1399_p6 = pnand %p1398_p10, %p1392_p9 }
  0x76   : > { %1402 = shalt.err (!%p1399_p6)
}
  0x77   : > { %s1403_s22 = scalar_lea.vmem %s1829_s11, 256  ;;  %s1596_s7 = smov [#allocation3]  }
  0x78   : > { %p1404_p11 = scmp.ne.s32.totalorder %s1829_s11, %s1403_s22  ;;  %s1408_s8 = sshll.u32 %s1596_s7, 4  ;;  %s1409_s8 = int_to_ptr.vmem [resolvable:$false] %s1408_s8 }
  0x79   : > { %s1410_s13 = scalar_lea.vmem %s1409_s8, 512  ;;  %p1411_p7 = scmp.lt.s32.totalorder %s1829_s11, %s1409_s8 }
  0x7a   : > { %p1406_p13 = pnand %p1404_p11, %p1390_p5  ;;  %p1412_p12 = scmp.lt.s32.totalorder %s1410_s13, %s1403_s22 }
  0x7c   : > { %p1407_p3 = pneg %p1406_p13  ;;  %p1413_p1 = por %p1412_p12, %p1411_p7 }
  0x7e   : > { %p1414_p2 = pnand %p1413_p1, %p1407_p3 }
  0x80   : > { %1417 = shalt.err (!%p1414_p2)
}
  0x81   : > { %s2134_s9 = smov 8   ;;  %s2135_s29 = smov 128  }
  0x82   : > { %1239 = dma.hbm_to_vmem [thread:$0]  (!%p1820_p0), %s1837_s24, 256, %s1829_s11, %s1839_s12, %s2135_s29, %s2135_s29, %s2134_s9  }
  0x83   : > { %s2136_s27 = sshll.u32 %s1827_s10, 7  ;;  %s391_s13 = scalar_lea.vmem [#allocation6], %s1811_s26 }
  0x84   : > { %s1875_s22 = scalar_lea.hbm %s2084_s1, %s2136_s27  ;;  %s400_s0 = sshll.u32 %s391_s13, 4  ;;  %s1878_s0 = int_to_ptr.vmem [resolvable:$true] %s400_s0 }
  0x85   : > { %s387_s28 = sand.u32 1, %s1590_s20   ;;  %s1418_s18 = scalar_lea.hbm %s1875_s22, 256 }
  0x86   : > { %s1881_s19 = scalar_lea.sflag [#allocation7], %s387_s28  ;;  %p1419_p9 = scmp.ne.s32.totalorder %s1875_s22, %s1418_s18 }
  0x87   : > { %s1423_s24 = scalar_lea.hbm %s2084_s1, 1536  ;;  %p1424_p6 = scmp.lt.u32.totalorder %s1875_s22, %s2084_s1 }
  0x88   : > { %p1421_p4 = pnand %p1419_p9, %p1390_p5  ;;  %p1425_p11 = scmp.lt.u32.totalorder %s1423_s24, %s1418_s18 }
  0x89   : > { %p1427_p3 = scmp.lt.u32.totalorder %s1418_s18, %s1875_s22 }
  0x8a   : > { %p1422_p10 = pneg %p1421_p4  ;;  %p1426_p13 = por %p1425_p11, %p1424_p6 }
  0x8c   : > { %p1428_p7 = por %p1427_p3, %p1426_p13 }
  0x8e   : > { %p1429_p12 = pnand %p1428_p7, %p1422_p10 }
  0x90   : > { %1432 = shalt.err (!%p1429_p12)
}
  0x91   : > { %s1433_s28 = scalar_lea.vmem %s1878_s0, 256  ;;  %s1597_s26 = smov [#allocation6]  }
  0x92   : > { %p1434_p1 = scmp.ne.s32.totalorder %s1878_s0, %s1433_s28  ;;  %s1438_s7 = sshll.u32 %s1597_s26, 4  ;;  %s1439_s7 = int_to_ptr.vmem [resolvable:$false] %s1438_s7 }
  0x93   : > { %s1440_s8 = scalar_lea.vmem %s1439_s7, 512  ;;  %p1441_p4 = scmp.lt.s32.totalorder %s1878_s0, %s1439_s7 }
  0x94   : > { %p1436_p2 = pnand %p1434_p1, %p1390_p5  ;;  %p1442_p6 = scmp.lt.s32.totalorder %s1440_s8, %s1433_s28 }
  0x96   : > { %p1437_p9 = pneg %p1436_p2  ;;  %p1443_p11 = por %p1442_p6, %p1441_p4 }
  0x98   : > { %p1444_p13 = pnand %p1443_p11, %p1437_p9 }
  0x9a   : > { %1447 = shalt.err (!%p1444_p13)
}
  0x9b   : > { %1242 = dma.hbm_to_vmem [thread:$0]  (!%p1820_p0), %s1875_s22, 256, %s1878_s0, %s1881_s19, %s2135_s29, %s2135_s29, %s2134_s9  }
  0x9c   : > { %p2137_p5 = scmp.ne.s32.totalorder %s2123_s25, 0 }
  0x9d   : > { %s1913_s18 = sand.u32 (!%p2137_p5), 1, %s1566_s14   ;;  %p2138_p10 = scmp.ne.s32.totalorder (!%p2137_p5), %s2120_s23, 0 }
  0x9e   : > { %412 = sbr.rel (%p2137_p5) target bundleno = 982 (0x3d6), region = 56  ;;  %s1916_s13 = sshll.u32 (!%p2137_p5), %s1913_s18, 4 }
  0x9f   : > { %s415_s2 = scalar_lea.sflag (!%p2137_p5), [#allocation4], %s1913_s18  ;;  %s418_s11 = scalar_lea.vmem (!%p2137_p5), [#allocation3], %s1916_s13 }
  0xa5   : > { %1537 = dma.done.wait (%p2138_p10), %s415_s2, 256  }
  0xa6   : > { %1539 = vsyncadd (%p2138_p10), %s415_s2, 4294967040  ;;  %s423_s0 = sand.u32 1, %s1700_s21   ;;  %s427_s25 = scalar_lea.vmem [#allocation6], %s1916_s13 }
  0xa7   : > { %s424_s19 = scalar_lea.sflag [#allocation7], %s423_s0 }
  0xa8   : > { %1541 = dma.done.wait (%p2138_p10), %s424_s19, 256  }
  0xa9   : > { %1543 = vsyncadd (%p2138_p10), %s424_s19, 4294967040  ;;  %p2139_p0 = scmp.eq.s32.totalorder %s1700_s21, 0 }
  0xab   : > { %1545 = dma.done.wait (%p2139_p0), [#allocation7], 2048   ;;  %p2140_p3 = pmov %p2139_p0 }
  0xac   : > { %p2141_p7 = pmov %p2139_p0 }
  0xad   : > { %1547 = vsyncadd (%p2140_p3), [#allocation7], 4294965248 }
  0xae   : > { %1549 = dma.done.wait (%p2141_p7), [#allocation10], 2048   ;;  %p2142_p12 = pmov %p2139_p0 }
  0xaf   : > { %s1939_s9 = scalar_lea.vmem [#allocation11], %s1916_s13  ;;  %s1942_s29 = scalar_lea.vmem [#allocation12], %s1916_s13 }
  0xb0   : > { %1551 = vsyncadd (%p2142_p12), [#allocation10], 4294965248  ;;  %p1025_p1 = scmp.ne.s32.totalorder %s1574_s16, 0 }
  0xb1   : > { %v1598_v0 = vmov (!%p1025_p1), 0.0  }
  0xb2   : > { %489 = sbr.rel (%p1025_p1) target bundleno = 185 (0xb9), region = 76  ;;  %490 = vst [vmem:[#allocation2] sm:$0xff] (!%p1025_p1), %v1598_v0 }
  0xb9 PF: > { %v493_v1 = vld [vmem:[#allocation8] sm:$0xff]  ;;  %v494_v2 = vld [vmem:[#allocation8 + $0x8] sm:$0xff]  ;;  %v495_v3 = vld [vmem:[#allocation8 + $0x10] sm:$0xff]  ;;  %v611_v51 = vlaneseq  ;;  %s1211_s27 = smul.u32 6, %s1578_s17  ;;  %s1033_s28 = sshll.u32 %s1574_s16, 1 }
  0xba   : > { %v1145_v4 = vpack.c.bf16 %v494_v2, %v493_v1  ;;  %v496_v5 = vld [vmem:[#allocation8 + $0x18] sm:$0xff]  ;;  %v497_v7 = vld [vmem:[#allocation8 + $0x20] sm:$0xff]  ;;  %v498_v8 = vld [vmem:[#allocation8 + $0x28] sm:$0xff]  ;;  %s2143_s2 = sld [smem:[#allocation32_spill]]  ;;  %s836_s0 = sshll.u32 %s1942_s29, 4  ;;  %s1981_s0 = int_to_ptr.vmem [resolvable:$true] %s836_s0 }
  0xbb   : > { %v1149_v6 = vpack.c.bf16 %v496_v5, %v495_v3  ;;  %v1153_v9 = vpack.c.bf16 %v498_v8, %v497_v7  ;;  %v499_v10 = vld [vmem:[#allocation8 + $0x30] sm:$0xff]  ;;  %v500_v11 = vld [vmem:[#allocation8 + $0x38] sm:$0xff]  ;;  %v510_v13 = vld [vmem:[#allocation9] sm:$0xff]  ;;  %v612_v52 = vshrl.u32 %v611_v51, 7  ;;  %s1970_s26 = sadd.s32 %s1211_s27, %s1033_s28  ;;  %s803_s19 = scalar_lea.sflag [#allocation13], %s1913_s18 }
  0xbc   : > { %1146 = vmatprep.subr.bf16.mxu0 %v1145_v4  ;;  %v491_v12 = vld [vmem:[%s418_s11] sm:$0xff]  ;;  %v511_v14 = vld [vmem:[#allocation9 + $0x8] sm:$0xff]  ;;  %v513_v17 = vld [vmem:[#allocation9 + $0x18] sm:$0xff]  ;;  %v1157_v21 = vpack.c.bf16 %v500_v11, %v499_v10  ;;  %s1034_s7 = sshll.u32 %s1970_s26, 7  ;;  %s1448_s17 = scalar_lea.vmem %s1981_s0, 256 }
  0xbd   : > { %1148 = vmatpush3.bf16.msra.mxu0 %v1145_v4  ;;  %1107 = vmatprep.mubr.f32.mxu0 %v491_v12  ;;  %v512_v15 = vld [vmem:[#allocation9 + $0x10] sm:$0xff]  ;;  %v1177_v16 = vpack.c.bf16 %v511_v14, %v510_v13  ;;  %v514_v19 = vld [vmem:[#allocation9 + $0x20] sm:$0xff]  ;;  %v515_v20 = vld [vmem:[#allocation9 + $0x28] sm:$0xff]  ;;  %v613_v53 = vsub.s32 3, %v612_v52  ;;  %v628_v57 = vsub.s32 2, %v612_v52  ;;  %v642_v63 = vsub.s32 1, %v612_v52  ;;  %p1449_p2 = scmp.ne.s32.totalorder %s1981_s0, %s1448_s17 }
  0xbe   : > { %1150 = vmatprep.subr.bf16.mxu0 %v1149_v6  ;;  %v1181_v18 = vpack.c.bf16 %v513_v17, %v512_v15  ;;  %v501_v22 = vld [vmem:[#allocation8 + $0x40] sm:$0xff]  ;;  %v502_v23 = vld [vmem:[#allocation8 + $0x48] sm:$0xff]  ;;  %v1185_v24 = vpack.c.bf16 %v515_v20, %v514_v19  ;;  %v516_v25 = vld [vmem:[#allocation9 + $0x30] sm:$0xff]  ;;  %v656_v0 = vsub.s32 0, %v612_v52  ;;  %vm623_vm0 = vcmp.lt.s32.totalorder %v612_v52, 1  ;;  %s1600_s16 = smov [#allocation12]  }
  0xbf   : > { %1178 = vmatprep.subr.bf16.mxu1 %v1177_v16  ;;  %v517_v26 = vld [vmem:[#allocation9 + $0x38] sm:$0xff]  ;;  %v1161_v27 = vpack.c.bf16 %v502_v23, %v501_v22  ;;  %v503_v28 = vld [vmem:[#allocation8 + $0x50] sm:$0xff]  ;;  %v518_v31 = vld [vmem:[#allocation9 + $0x40] sm:$0xff]  ;;  %vm637_vm1 = vcmp.lt.s32.totalorder %v612_v52, 2  ;;  %vm651_vm2 = vcmp.lt.s32.totalorder %v612_v52, 3  ;;  %p1450_p9 = pnand %p1449_p2, %p1803_p8 }
  0xc0   : > { %1180 = vmatpush3.bf16.msra.mxu1 %v1177_v16  ;;  %v504_v29 = vld [vmem:[#allocation8 + $0x58] sm:$0xff]  ;;  %v1189_v30 = vpack.c.bf16 %v517_v26, %v516_v25  ;;  %v519_v32 = vld [vmem:[#allocation9 + $0x48] sm:$0xff]  ;;  %v505_v34 = vld [vmem:[#allocation8 + $0x60] sm:$0xff] }
  0xc1   : > { %1152 = vmatpush3.bf16.msra.mxu0 %v1149_v6  ;;  %1182 = vmatprep.subr.bf16.mxu1 %v1181_v18  ;;  %v1165_v33 = vpack.c.bf16 %v504_v29, %v503_v28  ;;  %v506_v35 = vld [vmem:[#allocation8 + $0x68] sm:$0xff]  ;;  %v1193_v36 = vpack.c.bf16 %v519_v32, %v518_v31  ;;  %v520_v37 = vld [vmem:[#allocation9 + $0x50] sm:$0xff]  ;;  %v521_v38 = vld [vmem:[#allocation9 + $0x58] sm:$0xff]  ;;  %p1451_p4 = pneg %p1450_p9 }
  0xc2   : > { %1154 = vmatprep.subr.bf16.mxu0 %v1153_v9  ;;  %v1169_v39 = vpack.c.bf16 %v506_v35, %v505_v34  ;;  %v507_v40 = vld [vmem:[#allocation8 + $0x70] sm:$0xff]  ;;  %v508_v41 = vld [vmem:[#allocation8 + $0x78] sm:$0xff]  ;;  %v1197_v42 = vpack.c.bf16 %v521_v38, %v520_v37  ;;  %v522_v43 = vld [vmem:[#allocation9 + $0x60] sm:$0xff] }
  0xc3   : > { %v523_v44 = vld [vmem:[#allocation9 + $0x68] sm:$0xff]  ;;  %v1173_v45 = vpack.c.bf16 %v508_v41, %v507_v40  ;;  %v524_v48 = vld [vmem:[#allocation9 + $0x70] sm:$0xff]  ;;  %v525_v49 = vld [vmem:[#allocation9 + $0x78] sm:$0xff] }
  0xc4   : > { %1184 = vmatpush3.bf16.msra.mxu1 %v1181_v18  ;;  %v1201_v46 = vpack.c.bf16 %v523_v44, %v522_v43  ;;  %v492_v47 = vld [vmem:[%s418_s11 + $0x8] sm:$0xff]  ;;  %v1205_v50 = vpack.c.bf16 %v525_v49, %v524_v48  ;;  %v663_v31 = vld [vmem:[%s427_s25] sm:$0xff]  ;;  %s1978_s11 = scalar_lea.hbm %s2143_s2, %s1034_s7 }
  0xc5   : > { %1156 = vmatpush3.bf16.msra.mxu0 %v1153_v9  ;;  %1186 = vmatprep.subr.bf16.mxu1 %v1185_v24  ;;  %v527_v54 = vld [vmem:[%s2089_s6] sm:$0xf] }
  0xc6   : > { %1158 = vmatprep.subr.bf16.mxu0 %v1157_v21  ;;  %v1026_v55 = vld [vmem:[%s2086_s3] ss:$0 sm:$0xff]  ;;  %v614_v59 = vrot.slane %v527_v54, %v613_v53  ;;  %v629_v6 = vrot.slane %v527_v54, %v628_v57  ;;  %v643_v11 = vrot.slane %v527_v54, %v642_v63  ;;  %v657_v12 = vrot.slane %v527_v54, %v656_v0 }
  0xc7   : > { %v617_v56 = vld [vmem:[#allocation2] sm:$0xff] }
  0xc8   : > { %1188 = vmatpush3.bf16.msra.mxu1 %v1185_v24  ;;  %v618_v62 = vrot.slane %v617_v56, 7  ;;  %v634_v2 = vrot.slane %v617_v56, 6  ;;  %v648_v3 = vrot.slane %v617_v56, 5  ;;  %v664_v32 = vld [vmem:[%s427_s25 + $0x8] sm:$0xff]  ;;  %s1452_s25 = sshll.u32 %s1600_s16, 4  ;;  %s1453_s25 = int_to_ptr.vmem [resolvable:$false] %s1452_s25 }
  0xc9   : > { %1160 = vmatpush3.bf16.msra.mxu0 %v1157_v21  ;;  %1190 = vmatprep.subr.bf16.mxu1 %v1189_v30  ;;  %v1027_v37 = vld [vmem:[%s2088_s5] ss:$0 sm:$0xff]  ;;  %s1454_s21 = scalar_lea.vmem %s1453_s25, 512  ;;  %p1455_p6 = scmp.lt.s32.totalorder %s1981_s0, %s1453_s25 }
  0xca   : > { %1162 = vmatprep.subr.bf16.mxu0 %v1161_v27  ;;  %p1456_p11 = scmp.lt.s32.totalorder %s1454_s21, %s1448_s17 }
  0xcc   : > { %1192 = vmatpush3.bf16.msra.mxu1 %v1189_v30  ;;  %p1457_p13 = por %p1456_p11, %p1455_p6 }
  0xcd   : > { %1164 = vmatpush3.bf16.msra.mxu0 %v1161_v27  ;;  %1194 = vmatprep.subr.bf16.mxu1 %v1193_v36 }
  0xce   : > { %1166 = vmatprep.subr.bf16.mxu0 %v1165_v33  ;;  %p1458_p5 = pnand %p1457_p13, %p1451_p4 }
  0xd0   : > { %1196 = vmatpush3.bf16.msra.mxu1 %v1193_v36 }
  0xd1   : > { %1168 = vmatpush3.bf16.msra.mxu0 %v1165_v33  ;;  %1198 = vmatprep.subr.bf16.mxu1 %v1197_v42 }
  0xd2   : > { %1170 = vmatprep.subr.bf16.mxu0 %v1169_v39 }
  0xd4   : > { %1200 = vmatpush3.bf16.msra.mxu1 %v1197_v42  ;;  %v751_v42 = vand.u32 127, %v611_v51 }
  0xd5   : > { %1172 = vmatpush3.bf16.msra.mxu0 %v1169_v39  ;;  %1202 = vmatprep.subr.bf16.mxu1 %v1201_v46 }
  0xd6   : > { %1174 = vmatprep.subr.bf16.mxu0 %v1173_v45  ;;  %vm752_vm3 = vcmp.lt.s32.totalorder %v751_v42, 32 }
  0xd8   : > { %1204 = vmatpush3.bf16.msra.mxu1 %v1201_v46 }
  0xd9   : > { %1176 = vmatpush3.bf16.msra.mxu0 %v1173_v45  ;;  %1206 = vmatprep.subr.bf16.mxu1 %v1205_v50  ;;  %v1599_v45 = vmov 0.0  }
  0xda   : > { %v1028_v46 = vsel %vm752_vm3, 1.0, %v1599_v45 }
  0xdc   : > { %1108 = vmatmul.mubr.f32.vlgmr.msra.gmra.mrb[0].mxu0 %v492_v47  ;;  %1208 = vmatpush3.bf16.msra.mxu1 %v1205_v50 }
 0x1af   : > { %v1109_v58 = vpop.f32.mrb[0].mxu0 }
 0x1b0   : > { %v608_v60 = vadd.f32 %v1109_v58, %v1026_v55  ;;  %v602_v61 = vpop.f32.mrb[1].mxu0 }
 0x1b1   : > { %v603_v1 = vadd.f32 %v1026_v55, %v602_v61 }
 0x1b2   : > { %v620_v4 = vrot.slane %v608_v60, 7  ;;  %v636_v5 = vrot.slane %v608_v60, 6  ;;  %662 = vst [vmem:[#allocation2] sm:$0xff] %v608_v60  ;;  %v650_v7 = vrot.slane %v608_v60, 5  ;;  %v616_v18 = vmul.f32 %v614_v59, %v608_v60 }
 0x1b3   : > { %v619_v8 = vrot.slane %v603_v1, 7  ;;  %v635_v9 = vrot.slane %v603_v1, 6  ;;  %v649_v10 = vrot.slane %v603_v1, 5  ;;  %1142 = vmatprep.mubr.f32.mxu1 %v603_v1  ;;  %v615_v17 = vmul.f32 %v614_v59, %v603_v1 }
 0x1b4   : > { %1143 = vmatmul.mubr.f32.vlgmr.msra.gmra.mrb[0].mxu1 %v608_v60 }
 0x1b5   : > { %v624_v13 = vsel %vm623_vm0, %v619_v8, %v620_v4  ;;  %v625_v14 = vsel %vm623_vm0, %v618_v62, %v619_v8  ;;  %v638_v15 = vsel %vm637_vm1, %v635_v9, %v636_v5  ;;  %v639_v16 = vsel %vm637_vm1, %v634_v2, %v635_v9 }
 0x1b6   : > { %v630_v19 = vmul.f32 %v629_v6, %v625_v14  ;;  %v631_v20 = vmul.f32 %v629_v6, %v624_v13  ;;  %v652_v21 = vsel %vm651_vm2, %v649_v10, %v650_v7  ;;  %v653_v22 = vsel %vm651_vm2, %v648_v3, %v649_v10 }
 0x1b7   : > { %v644_v25 = vmul.f32 %v643_v11, %v639_v16  ;;  %v645_v26 = vmul.f32 %v643_v11, %v638_v15  ;;  %v658_v29 = vmul.f32 %v657_v12, %v653_v22  ;;  %v659_v30 = vmul.f32 %v657_v12, %v652_v21 }
 0x1b8   : > { %v632_v23 = vadd.f32 %v630_v19, %v615_v17  ;;  %v633_v24 = vadd.f32 %v631_v20, %v616_v18 }
 0x1ba   : > { %v646_v27 = vadd.f32 %v644_v25, %v632_v23  ;;  %v647_v28 = vadd.f32 %v645_v26, %v633_v24 }
 0x1bc   : > { %v660_v33 = vadd.f32 %v658_v29, %v646_v27  ;;  %v661_v34 = vadd.f32 %v659_v30, %v647_v28 }
 0x1be   : > { %v665_v35 = vadd.f32 %v663_v31, %v660_v33  ;;  %v666_v36 = vadd.f32 %v664_v32, %v661_v34 }
 0x1c0   : > { %667 = vst [vmem:[%s1942_s29] sm:$0xff] %v665_v35  ;;  %668 = vst [vmem:[%s1942_s29 + $0x8] sm:$0xff] %v666_v36 }
 0x287   : > { %v1144_v38 = vpop.f32.mrb[0].mxu1 }
 0x288   : > { %v741_v39 = vpop.f32.mrb[1].mxu1  ;;  %v747_v41 = vadd.f32 %v1144_v38, %v1027_v37 }
 0x289   : > { %v742_v40 = vadd.f32 %v1027_v37, %v741_v39 }
 0x28b   : > { %755 = vadd.xlane.f32.xlu0 %v742_v40 }
 0x28f   : > { %757 = vadd.xlane.f32.xlu0 %v747_v41 }
 0x318   : > { %v756_v43 = vpop.xlane.xlu0 %755 }
 0x319   : > { %v759_v44 = vmul.f32 0.03125, %v756_v43 }
 0x31b   : > { %v761_v47 = vsub.f32 %v742_v40, %v759_v44 }
 0x31c   : > { %v758_v48 = vpop.xlane.xlu0 %757 }
 0x31d   : > { %v760_v49 = vmul.f32 0.03125, %v758_v48  ;;  %v763_v50 = vmul.f32 %v1028_v46, %v761_v47 }
 0x31f   : > { %v762_v52 = vsub.f32 %v747_v41, %v760_v49  ;;  %v765_v53 = vmul.f32 %v763_v50, %v763_v50 }
 0x321   : > { %767 = vadd.xlane.f32.xlu1 %v765_v53  ;;  %v764_v54 = vmul.f32 %v1028_v46, %v762_v52 }
 0x323   : > { %v766_v55 = vmul.f32 %v764_v54, %v764_v54 }
 0x325   : > { %769 = vadd.xlane.f32.xlu1 %v766_v55 }
 0x326   : > { %1461 = shalt.err (!%p1458_p5)
}
 0x327   : > { %s1462_s29 = scalar_lea.hbm %s1978_s11, 256  ;;  %s1466_s10 = scalar_lea.hbm %s2143_s2, 1536 }
 0x328   : > { %p1463_p10 = scmp.ne.s32.totalorder %s1978_s11, %s1462_s29  ;;  %p1467_p7 = scmp.lt.u32.totalorder %s1978_s11, %s2143_s2 }
 0x329   : > { %p1468_p12 = scmp.lt.u32.totalorder %s1466_s10, %s1462_s29  ;;  %p1470_p2 = scmp.lt.u32.totalorder %s1462_s29, %s1978_s11 }
 0x32a   : > { %p1464_p0 = pnand %p1463_p10, %p1803_p8 }
 0x32b   : > { %p1469_p1 = por %p1468_p12, %p1467_p7 }
 0x32c   : > { %p1465_p3 = pneg %p1464_p0 }
 0x32d   : > { %p1471_p9 = por %p1470_p2, %p1469_p1 }
 0x32f   : > { %p1472_p4 = pnand %p1471_p9, %p1465_p3 }
 0x331   : > { %1475 = shalt.err (!%p1472_p4)
}
 0x332   : > { %s1601_s27 = smov 128   ;;  %s1602_s28 = smov 8  }
 0x333   : > { %1226 = dma.vmem_to_hbm [thread:$0]  (%p1803_p8), %s1981_s0, 256, %s1978_s11, %s803_s19, %s1601_s27, %s1601_s27, %s1602_s28  }
 0x334   : > { %s2144_s17 = sld [smem:[#allocation29_spill]]  ;;  %s2145_s19 = sld [smem:[#allocation30_spill]] }
 0x335   : > { %s818_s16 = sshll.u32 %s1939_s9, 4  ;;  %s2146_s29 = sld [smem:[#allocation31_spill]]  ;;  %s2025_s16 = int_to_ptr.vmem [resolvable:$true] %s818_s16 }
 0x336   : > { %s798_s22 = scalar_lea.sflag [#allocation5], %s1913_s18  ;;  %s1476_s10 = scalar_lea.vmem %s2025_s16, 256 }
 0x337   : > { %p1477_p6 = scmp.ne.s32.totalorder %s2025_s16, %s1476_s10  ;;  %s1603_s24 = smov [#allocation11]  }
 0x338   : > { %s1480_s12 = sshll.u32 %s1603_s24, 4  ;;  %s1481_s12 = int_to_ptr.vmem [resolvable:$false] %s1480_s12 }
 0x339   : > { %p1478_p11 = pnand %p1477_p6, %p1803_p8  ;;  %s1482_s26 = scalar_lea.vmem %s1481_s12, 512 }
 0x33a   : > { %v1029_v62 = vld [vmem:[%s2144_s17] ss:$0 sm:$0xff]  ;;  %p1483_p5 = scmp.lt.s32.totalorder %s2025_s16, %s1481_s12  ;;  %p1484_p10 = scmp.lt.s32.totalorder %s1482_s26, %s1476_s10 }
 0x33b   : > { %v1030_v0 = vld [vmem:[%s2145_s19] ss:$0 sm:$0xff]  ;;  %s2023_s23 = scalar_lea.hbm %s2146_s29, %s1034_s7  ;;  %p1479_p13 = pneg %p1478_p11 }
 0x33c   : > { %p1485_p0 = por %p1484_p10, %p1483_p5 }
 0x33e   : > { %p1486_p3 = pnand %p1485_p0, %p1479_p13 }
 0x3ae   : > { %v768_v51 = vpop.xlane.xlu1 %767 }
 0x3af   : > { %v771_v56 = vmul.f32 0.03125, %v768_v51 }
 0x3b1   : > { %v773_v57 = vadd.f32 1e-05, %v771_v56 }
 0x3b2   : > { %v770_v58 = vpop.xlane.xlu1 %769 }
 0x3b3   : > { %1328 = vrsqrt.f32 %v773_v57  ;;  %v772_v59 = vmul.f32 0.03125, %v770_v58 }
 0x3b5   : > { %v774_v60 = vadd.f32 1e-05, %v772_v59 }
 0x3b7   : > { %1330 = vrsqrt.f32 %v774_v60 }
 0x3bd   : > { %v1329_v61 = vpop.eup %1328 }
 0x3be   : > { %v777_v63 = vmul.f32 %v1329_v61, %v763_v50 }
 0x3c0   : > { %v785_v1 = vmul.f32 %v1029_v62, %v777_v63 }
 0x3c1   : > { %v1331_v2 = vpop.eup %1330 }
 0x3c2   : > { %v778_v3 = vmul.f32 %v1331_v2, %v764_v54  ;;  %v793_v4 = vadd.f32 %v1030_v0, %v785_v1 }
 0x3c4   : > { %v786_v5 = vmul.f32 %v1029_v62, %v778_v3  ;;  %795 = vst [vmem:[%s1939_s9] sm:$0xff] %v793_v4 }
 0x3c6   : > { %v794_v6 = vadd.f32 %v1030_v0, %v786_v5 }
 0x3c8   : > { %796 = vst [vmem:[%s1939_s9 + $0x8] sm:$0xff] %v794_v6 }
 0x3c9   : > { %1489 = shalt.err (!%p1486_p3)
}
 0x3ca   : > { %s1490_s9 = scalar_lea.hbm %s2023_s23, 256  ;;  %s1494_s13 = scalar_lea.hbm %s2146_s29, 1536 }
 0x3cb   : > { %p1491_p7 = scmp.ne.s32.totalorder %s2023_s23, %s1490_s9  ;;  %p1495_p2 = scmp.lt.u32.totalorder %s2023_s23, %s2146_s29 }
 0x3cc   : > { %p1496_p9 = scmp.lt.u32.totalorder %s1494_s13, %s1490_s9  ;;  %p1498_p6 = scmp.lt.u32.totalorder %s1490_s9, %s2023_s23 }
 0x3cd   : > { %p1492_p12 = pnand %p1491_p7, %p1803_p8 }
 0x3ce   : > { %p1497_p4 = por %p1496_p9, %p1495_p2 }
 0x3cf   : > { %p1493_p1 = pneg %p1492_p12 }
 0x3d0   : > { %p1499_p11 = por %p1498_p6, %p1497_p4 }
 0x3d2   : > { %p1500_p13 = pnand %p1499_p11, %p1493_p1 }
 0x3d4   : > { %1503 = shalt.err (!%p1500_p13)
}
 0x3d5   : > { %1225 = dma.vmem_to_hbm [thread:$0]  (%p1803_p8), %s2025_s16, 256, %s2023_s23, %s798_s22, %s1601_s27, %s1601_s27, %s1602_s28  }
 0x3d6 PF: > { %s2147_s0 = sld [smem:[#allocation20_spill]]  ;;  %s2148_s19 = sld [smem:[#allocation23_spill]] }
 0x3d7   : > { %p1255_p5 = scmp.ge.s32.totalorder %s1590_s20, 2 }
 0x3dc   : > { %s851_s25 = sand.u32 1, %s2147_s0   ;;  %p2149_p10 = scmp.ne.s32.totalorder %s2148_s19, 0 }
 0x3dd   : > { %s852_s21 = scalar_lea.sflag [#allocation5], %s851_s25 }
 0x3de   : > { %p1244_p0 = pnand %p1255_p5, %p2149_p10 }
 0x3e0   : > { %1553 = dma.done.wait (!%p1244_p0), %s852_s21, 256  }
 0x3e1   : > { %1555 = vsyncadd (!%p1244_p0), %s852_s21, 4294967040  ;;  %s861_s30 = scalar_lea.sflag [#allocation13], %s851_s25 }
 0x3e2   : > { %1557 = dma.done.wait (!%p1244_p0), %s861_s30, 256  }
 0x3e3   : > { %1559 = vsyncadd (!%p1244_p0), %s861_s30, 4294967040  ;;  %s34_s20 = sadd.s32 1, %s1590_s20   ;;  %s2150_s16 = sld [smem:[#allocation21_spill]] }
 0x3e4   : > { %p31_p3 = scmp.ge.s32.totalorder %s34_s20, 8   ;;  %s2151_s17 = sld [smem:[#allocation22_spill]] }
 0x3e5   : > { %s2152_s18 = sld [smem:[#allocation24_spill]]  ;;  %s2153_s19 = sld [smem:[#allocation25_spill]] }
 0x3e6   : > { %s2154_s13 = smov %s1566_s14  ;;  %s2155_s14 = smov %s1570_s15 }
 0x3e7   : > { %s2156_s15 = smov %s1825_s4  ;;  %33 = sbr.rel (!%p31_p3) target bundleno = 20 (0x14), region = 143 }
 0x3ee   :  { %866 = vsyncpa [#allocation4], 1 }
 0x3ef   :  { %868 = vsyncpa [#allocation4 + $0x1], 1 }
 0x3f0   :  { %869 = vsyncpa [#allocation7], 1 }
 0x3f1   :  { %871 = vsyncpa [#allocation7 + $0x1], 1 }
 0x3f2   :  { %872 = vsyncpa [#allocation10], 1 }
 0x3f3   :  { %873 = vsyncpa [#allocation5], 1 }
 0x3f4   :  { %875 = vsyncpa [#allocation5 + $0x1], 1 }
 0x3f5   :  { %876 = vsyncpa [#allocation13], 1 }
 0x3f6   :  { %878 = vsyncpa [#allocation13 + $0x1], 1 }

</bundles_post_ra>
